<compile_context>
chip_gen: v7x
topology: tpu7x:2x2x1
jax: 0.10.0
libtpu: 0.0.40
codegen_flags: <defaults>
</compile_context>

<pallas_src>
import jax
import jax.numpy as jnp
from jax import lax
from jax.experimental import pallas as pl
from jax.experimental.pallas import tpu as pltpu

MARGIN = 2.0            # contrastive-loss margin used with SiameseNetwork
EPS = 1e-6              # F.pairwise_distance default eps
_MIB = 1024 * 1024
_OUT_TILE = (8, 128)    # lane/sublane-dense output tile (unmasked vst)


def _vmem_limit_bytes():
    """Per-generation scoped-VMEM request (64 MiB on 128-MiB chips, 48 MiB on v7x)."""
    try:
        cap = int(pltpu.get_tpu_info().vmem_capacity_bytes)
    except Exception:
        cap = 64 * _MIB            # conservative default (v7x per-TensorCore VMEM)
    return int(min(cap * 3 // 4, 64 * _MIB))


def _contrastive_loss_ref(output1, output2, label, *, margin=MARGIN, eps=EPS):
    """Pure-JAX reference / small-problem fallback (same math as the PyTorch head)."""
    diff = output1.astype(jnp.float32) - output2.astype(jnp.float32) + eps
    d2 = jnp.sum(diff * diff, axis=-1)
    d = jnp.sqrt(d2)
    lab = jnp.reshape(label, (-1,)).astype(jnp.float32)
    hinge = jnp.maximum(margin - d, 0.0)
    return jnp.mean((1.0 - lab) * d2 + lab * hinge * hinge)


def _make_kernel(true_b, tb, margin, eps):
    def kernel(o1_ref, o2_ref, lab_ref, out_ref, acc_ref):
        i = pl.program_id(0)

        @pl.when(i == 0)
        def _init():
            acc_ref[...] = jnp.zeros_like(acc_ref)

        # Upcast in vregs (inputs may stream as bf16); all math in f32.
        diff = (o1_ref[...].astype(jnp.float32)
                - o2_ref[...].astype(jnp.float32)) + eps           # (TB, D)
        d2 = jnp.sum(diff * diff, axis=-1, keepdims=True)           # (TB, 1)
        d = jnp.sqrt(d2)
        lab = lab_ref[...].astype(jnp.float32)                      # (TB, 1)
        hinge = jnp.maximum(margin - d, 0.0)
        per_row = (1.0 - lab) * d2 + lab * (hinge * hinge)          # (TB, 1)

        # Ragged last tile: rows past the true batch hold unspecified data
        # (the DMA is clipped to the array); `where` selects them out so any
        # garbage / NaN in the tail never reaches the accumulator.
        row_ids = i * tb + lax.broadcasted_iota(jnp.int32, (tb, 1), 0)
        per_row = jnp.where(row_ids < true_b, per_row, 0.0)

        # Plain vector accumulate each step; cross-sublane reduce only once below.
        acc_ref[...] += per_row

        @pl.when(i == pl.num_programs(0) - 1)
        def _finalize():
            total = jnp.sum(acc_ref[...], axis=0, keepdims=True)    # (1, 1)
            # Fill the whole (8, 128) tile -> unmasked, lane-dense final store.
            out_ref[...] = jnp.broadcast_to(total, out_ref.shape)

    return kernel


def contrastive_loss(output1, output2, label, *, margin=MARGIN, eps=EPS,
                     force_pallas=False, min_pallas_bytes=4 * _MIB):
    """output1, output2: (B, D) float (f32/bf16); label: (B,) or (B, 1). Returns f32 scalar."""
    assert output1.ndim == 2 and output1.shape == output2.shape
    B, D = output1.shape
    if output2.dtype != output1.dtype:
        output2 = output2.astype(output1.dtype)     # keep one streaming dtype
    itemsize = jnp.dtype(output1.dtype).itemsize

    # Small-problem fallback: dispatch/launch overhead would dominate; let XLA
    # fuse this head with the upstream forward_once output instead.
    if not force_pallas and 2 * B * D * itemsize < min_pallas_bytes:
        return _contrastive_loss_ref(output1, output2, label, margin=margin, eps=eps)

    lab = jnp.reshape(label, (B, 1)).astype(jnp.float32)

    vmem_limit = _vmem_limit_bytes()
    budget = vmem_limit // 2
    # Per-row VMEM cost: double-buffered o1/o2 blocks (native dtype) + the f32
    # elementwise intermediates inside the kernel + the tiny label block.
    per_row_bytes = 4 * D * itemsize + 12 * D + 16
    TB = int(max(8, min(4096, (budget // per_row_bytes) // 8 * 8)))

    if B >= 8:
        # Keep TB <= B (multiple of 8) so every block start lies inside the
        # array; the ragged tail (< 8 rows) is just a partial last block.
        TB = min(TB, (B // 8) * 8)
        o1, o2 = output1, output2
        Bp = B
    else:
        # Tiny batch: pad to a single 8-row tile (a few rows; negligible copy).
        TB = 8
        Bp = 8
        o1 = jnp.zeros((8, D), output1.dtype).at[:B].set(output1)
        o2 = jnp.zeros((8, D), output2.dtype).at[:B].set(output2)
        lab = jnp.zeros((8, 1), jnp.float32).at[:B].set(lab)

    NB = (Bp + TB - 1) // TB

    out = pl.pallas_call(
        _make_kernel(B, TB, float(margin), float(eps)),
        out_shape=jax.ShapeDtypeStruct(_OUT_TILE, jnp.float32),
        grid_spec=pltpu.PrefetchScalarGridSpec(
            num_scalar_prefetch=0,
            grid=(NB,),
            in_specs=[
                pl.BlockSpec((TB, D), lambda i: (i, 0)),
                pl.BlockSpec((TB, D), lambda i: (i, 0)),
                pl.BlockSpec((TB, 1), lambda i: (i, 0)),
            ],
            out_specs=pl.BlockSpec(_OUT_TILE, lambda i: (0, 0)),
            scratch_shapes=[pltpu.VMEM((TB, 1), jnp.float32)],
        ),
        compiler_params=pltpu.CompilerParams(
            dimension_semantics=("arbitrary",),      # resident-accumulator axis
            vmem_limit_bytes=vmem_limit,
        ),
    )(o1, o2, lab)

    return out[0, 0] * (1.0 / B)


if __name__ == "__main__":
    key = jax.random.PRNGKey(0)
    k1, k2, k3, k4, k5 = jax.random.split(key, 5)

    # (1) Module-consistent embedding size: fc1 ends in Linear(128, 2) -> D = 2.
    B, D = 8, 2
    o1 = jax.random.normal(k1, (B, D), dtype=jnp.float32)
    o2 = jax.random.normal(k2, (B, D), dtype=jnp.float32)
    lab = jax.random.bernoulli(k3, 0.5, (B,)).astype(jnp.float32)
    loss = contrastive_loss(o1, o2, lab, force_pallas=True)
    jax.block_until_ready(loss)
    ref = _contrastive_loss_ref(o1, o2, lab)
    assert jnp.allclose(loss, ref, rtol=1e-5, atol=1e-5), (loss, ref)

    # (2) Ragged batch: exercises the in-kernel row mask (no wrapper padding).
    B2, D2 = 13, 32
    o1r = jax.random.normal(k4, (B2, D2), dtype=jnp.float32)
    o2r = jax.random.normal(k5, (B2, D2), dtype=jnp.float32)
    labr = jax.random.bernoulli(k3, 0.5, (B2,)).astype(jnp.float32)
    loss_r = contrastive_loss(o1r, o2r, labr, force_pallas=True)
    jax.block_until_ready(loss_r)
    ref_r = _contrastive_loss_ref(o1r, o2r, labr)
    assert jnp.allclose(loss_r, ref_r, rtol=1e-5, atol=1e-5), (loss_r, ref_r)

    # (3) bf16 streaming path (cast happens in-kernel, no wrapper upcast).
    o1_bf = o1r.astype(jnp.bfloat16)
    o2_bf = o2r.astype(jnp.bfloat16)
    loss_bf = contrastive_loss(o1_bf, o2_bf, labr, force_pallas=True)
    jax.block_until_ready(loss_bf)
    ref_bf = _contrastive_loss_ref(o1_bf, o2_bf, labr)
    assert jnp.allclose(loss_bf, ref_bf, rtol=2e-3, atol=2e-3), (loss_bf, ref_bf)

    # (4) Small-problem fallback path (pure JAX, no pallas_call).
    loss_s = contrastive_loss(o1, o2, lab)
    jax.block_until_ready(loss_s)
    assert jnp.allclose(loss_s, ref, rtol=1e-5, atol=1e-5), (loss_s, ref)

    print("KERNEL_OK")
</pallas_src>

<mosaic_0001>
module attributes {stable_mosaic.version = 11 : i64} {
  func.func @kernel(%arg0: i32, %arg1: memref<8x2xf32, #tpu.memory_space<vmem>>, %arg2: memref<8x2xf32, #tpu.memory_space<vmem>>, %arg3: memref<8x1xf32, #tpu.memory_space<vmem>>, %arg4: memref<8x128xf32, #tpu.memory_space<vmem>>, %arg5: memref<8x1xf32, #tpu.memory_space<vmem>>) attributes {dimension_semantics = [#tpu.dimension_semantics<arbitrary>], iteration_bounds = array<i64: 1>, scalar_prefetch = 0 : i64, scratch_operands = 1 : i64, tpu.core_type = #tpu.core_type<tc>, window_params = [{transform_indices = @transform_0, window_bounds = array<i64: 8, 2>}, {transform_indices = @transform_1, window_bounds = array<i64: 8, 2>}, {transform_indices = @transform_2, window_bounds = array<i64: 8, 1>}, {pipeline_mode = #tpu.pipeline_mode<synchronous>, transform_indices = @transform_3, window_bounds = array<i64: 8, 128>}]} {
    %c0_i32 = arith.constant 0 : i32
    %0 = arith.cmpi eq, %arg0, %c0_i32 : i32
    %1 = arith.extui %0 : i1 to i32
    %c0_i32_0 = arith.constant 0 : i32
    %2 = arith.cmpi ne, %1, %c0_i32_0 : i32
    scf.if %2 {
      %cst_18 = arith.constant 0.000000e+00 : f32
      %37 = vector.broadcast %cst_18 : f32 to vector<8x1xf32>
      %c0_19 = arith.constant 0 : index
      %c0_20 = arith.constant 0 : index
      %38 = vector.load %arg5[%c0_19, %c0_20] : memref<8x1xf32, #tpu.memory_space<vmem>>, vector<8x1xf32>
      tpu.vector_store %arg5[%c0_19, %c0_20], %37 {strides = array<i32>} : memref<8x1xf32, #tpu.memory_space<vmem>>, vector<8x1xf32>,
    } else {
    }
    %c0 = arith.constant 0 : index
    %c0_1 = arith.constant 0 : index
    %3 = vector.load %arg1[%c0, %c0_1] : memref<8x2xf32, #tpu.memory_space<vmem>>, vector<8x2xf32>
    %c0_2 = arith.constant 0 : index
    %c0_3 = arith.constant 0 : index
    %4 = vector.load %arg2[%c0_2, %c0_3] : memref<8x2xf32, #tpu.memory_space<vmem>>, vector<8x2xf32>
    %5 = arith.subf %3, %4 : vector<8x2xf32>
    %cst = arith.constant 9.99999997E-7 : f32
    %6 = vector.broadcast %cst : f32 to vector<8x2xf32>
    %7 = arith.addf %5, %6 : vector<8x2xf32>
    %8 = arith.mulf %7, %7 : vector<8x2xf32>
    %cst_4 = arith.constant dense<0.000000e+00> : vector<8xf32>
    %9 = vector.multi_reduction <add>, %8, %cst_4 [1] : vector<8x2xf32> to vector<8xf32>
    %10 = vector.shape_cast %9 : vector<8xf32> to vector<8x1xf32>
    %11 = math.sqrt %10 : vector<8x1xf32>
    %c0_5 = arith.constant 0 : index
    %c0_6 = arith.constant 0 : index
    %12 = vector.load %arg3[%c0_5, %c0_6] : memref<8x1xf32, #tpu.memory_space<vmem>>, vector<8x1xf32>
    %cst_7 = arith.constant 2.000000e+00 : f32
    %13 = vector.broadcast %cst_7 : f32 to vector<8x1xf32>
    %14 = arith.subf %13, %11 : vector<8x1xf32>
    %cst_8 = arith.constant 0.000000e+00 : f32
    %15 = vector.broadcast %cst_8 : f32 to vector<8x1xf32>
    %16 = arith.maximumf %14, %15 : vector<8x1xf32>
    %cst_9 = arith.constant 1.000000e+00 : f32
    %17 = vector.broadcast %cst_9 : f32 to vector<8x1xf32>
    %18 = arith.subf %17, %12 : vector<8x1xf32>
    %19 = arith.mulf %18, %10 : vector<8x1xf32>
    %20 = arith.mulf %16, %16 : vector<8x1xf32>
    %21 = arith.mulf %12, %20 : vector<8x1xf32>
    %22 = arith.addf %19, %21 : vector<8x1xf32>
    %c8_i32 = arith.constant 8 : i32
    %23 = arith.muli %arg0, %c8_i32 : i32
    %24 = tpu.iota {dimensions = array<i32: 0>} : vector<8x1xi32>
    %25 = vector.broadcast %23 : i32 to vector<8x1xi32>
    %26 = arith.addi %25, %24 : vector<8x1xi32>
    %c8_i32_10 = arith.constant 8 : i32
    %27 = vector.broadcast %c8_i32_10 : i32 to vector<8x1xi32>
    %28 = arith.cmpi slt, %26, %27 : vector<8x1xi32>
    %cst_11 = arith.constant 0.000000e+00 : f32
    %29 = vector.broadcast %cst_11 : f32 to vector<8x1xf32>
    %30 = arith.select %28, %22, %29 : vector<8x1xi1>, vector<8x1xf32>
    %c0_12 = arith.constant 0 : index
    %c0_13 = arith.constant 0 : index
    %31 = vector.load %arg5[%c0_12, %c0_13] : memref<8x1xf32, #tpu.memory_space<vmem>>, vector<8x1xf32>
    %32 = arith.addf %31, %30 : vector<8x1xf32>
    %c0_14 = arith.constant 0 : index
    %c0_15 = arith.constant 0 : index
    %33 = vector.load %arg5[%c0_14, %c0_15] : memref<8x1xf32, #tpu.memory_space<vmem>>, vector<8x1xf32>
    tpu.vector_store %arg5[%c0_14, %c0_15], %32 {strides = array<i32>} : memref<8x1xf32, #tpu.memory_space<vmem>>, vector<8x1xf32>,
    %c0_i32_16 = arith.constant 0 : i32
    %34 = arith.cmpi eq, %arg0, %c0_i32_16 : i32
    %35 = arith.extui %34 : i1 to i32
    %c0_i32_17 = arith.constant 0 : i32
    %36 = arith.cmpi ne, %35, %c0_i32_17 : i32
    scf.if %36 {
      %c0_18 = arith.constant 0 : index
      %c0_19 = arith.constant 0 : index
      %37 = vector.load %arg5[%c0_18, %c0_19] : memref<8x1xf32, #tpu.memory_space<vmem>>, vector<8x1xf32>
      %cst_20 = arith.constant dense<0.000000e+00> : vector<1xf32>
      %38 = vector.multi_reduction <add>, %37, %cst_20 [0] : vector<8x1xf32> to vector<1xf32>
      %39 = vector.shape_cast %38 : vector<1xf32> to vector<1x1xf32>
      %40 = vector.shape_cast %39 : vector<1x1xf32> to vector<1x1xf32>
      %41 = vector.broadcast %40 : vector<1x1xf32> to vector<8x128xf32>
      %c0_21 = arith.constant 0 : index
      %c0_22 = arith.constant 0 : index
      %42 = vector.load %arg4[%c0_21, %c0_22] : memref<8x128xf32, #tpu.memory_space<vmem>>, vector<8x128xf32>
      tpu.vector_store %arg4[%c0_21, %c0_22], %41 {strides = array<i32>} : memref<8x128xf32, #tpu.memory_space<vmem>>, vector<8x128xf32>,
    } else {
    }
    return
  }
  func.func @transform_0(%arg0: i32) -> (i32, i32) {
    %c0_i32 = arith.constant 0 : i32
    %c0_i32_0 = arith.constant 0 : i32
    return %arg0, %c0_i32 : i32, i32
  }
  func.func @transform_1(%arg0: i32) -> (i32, i32) {
    %c0_i32 = arith.constant 0 : i32
    %c0_i32_0 = arith.constant 0 : i32
    return %arg0, %c0_i32 : i32, i32
  }
  func.func @transform_2(%arg0: i32) -> (i32, i32) {
    %c0_i32 = arith.constant 0 : i32
    %c0_i32_0 = arith.constant 0 : i32
    return %arg0, %c0_i32 : i32, i32
  }
  func.func @transform_3(%arg0: i32) -> (i32, i32) {
    %c0_i32 = arith.constant 0 : i32
    %c0_i32_0 = arith.constant 0 : i32
    %c0_i32_1 = arith.constant 0 : i32
    return %c0_i32, %c0_i32_0 : i32, i32
  }
}

</mosaic_0001>

<bundles_post_ra>
// kernel: tpu_custom_call.1
= control target key start
LH: loop header
LB: loop body
LE: loop exit
PB: predicated region body
PF: predicated region fallthrough
CT: control target
= control target key end

     0   :  { %s164_s0 = inlined_call_operand.vmem [shape: f32[8,2], index: 0, kind: input, shape index: {}]   ;;  %s165_s1 = inlined_call_operand.vmem [shape: f32[8,2], index: 1, kind: input, shape index: {}]   ;;  %s166_s2 = inlined_call_operand.vmem [shape: f32[8,1], index: 2, kind: input, shape index: {}]   ;;  %s167_s3 = inlined_call_operand.hbm [shape: f32[8,128], index: 3, kind: output, shape index: {}]  }
   0x1   :  { %v21_v0 = vld [vmem:[%s164_s0] sm:$0xff] }
   0x2   :  { %v22_v1 = vld [vmem:[%s165_s1] sm:$0xff] }
   0x3   :  { %v23_v2 = vsub.f32 %v21_v0, %v22_v1 }
   0x4   :  { %8 = vsyncpa [#allocation4], 0  ;;  %vm26_vm0 = vcmask 15360   ;;  %vm19_vm1 = vcmask 7168   ;;  %v117_v6 = vmov 0.0   ;;  %v118_v7 = vmov 0  }
   0x5   :  { %v24_v3 = vadd.f32 1e-06, %v23_v2  ;;  %20 = vst.msk [vmem:[#allocation2] sm:$0xff] %vm19_vm1, %v117_v6  ;;  %90 = vset.pattern.permute.xlu0 %v118_v7  ;;  %v37_v13 = vld [vmem:[%s166_s2] sm:$0xff]  ;;  %s119_s2 = smov [#allocation3]  }
   0x6   :  { %v40_v16 = vsub.f32 1.0, %v37_v13  ;;  %s79_s16 = sshll.u32 %s119_s2, 4  ;;  %s80_s16 = int_to_ptr.vmem [resolvable:$true] %s79_s16 }
   0x7   :  { %v25_v4 = vmul.f32 %v24_v3, %v24_v3  ;;  %s93_s17 = scalar_lea.vmem %s80_s16, 128  ;;  %p98_p1 = scmp.lt.s32.totalorder %s80_s16, %s80_s16 }
   0x8   :  { %p94_p0 = scmp.ne.s32.totalorder %s80_s16, %s93_s17  ;;  %p99_p2 = scmp.lt.s32.totalorder %s93_s17, %s93_s17 }
   0x9   :  { %v27_v5 = vsel %vm26_vm0, %v25_v4, 0.0 }
   0xa   :  { %28 = vadd.xlane.f32.xlu0 %v27_v5  ;;  %p100_p3 = por %p99_p2, %p98_p1 }
   0xc   :  { %v52_v21 = vld [vmem:[#allocation2] sm:$0xff]  ;;  %p101_p4 = pnand %p100_p3, %p94_p0 }
  0x97   :  { %v29_v8 = vpop.xlane.xlu0 %28 }
  0x98   :  { %91 = vrsqrt.f32 %v29_v8  ;;  %vm32_vm2 = vcmp.eq.f32.partialorder %v29_v8, inf  ;;  %v35_v11 = vand.u32 2147483648, %v29_v8  ;;  %vm34_vm3 = vcmp.eq.f32.partialorder %v29_v8, 0.0 }
  0x99   :  { %v41_v19 = vmul.f32 %v40_v16, %v29_v8 }
  0xa2   :  { %v92_v9 = vpop.eup %91 }
  0xa3   :  { %v31_v10 = vmul.f32 %v92_v9, %v29_v8 }
  0xa5   :  { %v33_v12 = vsel %vm32_vm2, %v29_v8, %v31_v10 }
  0xa6   :  { %v36_v14 = vsel %vm34_vm3, %v35_v11, %v33_v12 }
  0xa7   :  { %v38_v15 = vsub.f32 2.0, %v36_v14 }
  0xa9   :  { %v39_v17 = vmax.f32 %v38_v15, 0.0 }
  0xab   :  { %v42_v18 = vmul.f32 %v39_v17, %v39_v17 }
  0xad   :  { %v43_v20 = vmul.f32 %v42_v18, %v37_v13 }
  0xaf   :  { %v44_v22 = vadd.f32 %v43_v20, %v41_v19 }
  0xb1   :  { %v53_v23 = vadd.f32 %v52_v21, %v44_v22 }
  0xb3   :  { %55 = vst.msk [vmem:[#allocation2] sm:$0xff] %vm19_vm1, %v53_v23 }
  0xba   :  { %v59_v24 = vld [vmem:[#allocation2] sm:$0xff] }
  0xbb   :  { %v60_v25 = vsel %vm19_vm1, %v59_v24, 0.0 }
  0xbc   :  { %v61_v26 = vrot.slane %v60_v25, 4 }
  0xbe   :  { %v62_v27 = vadd.f32 %v61_v26, %v60_v25 }
  0xc0   :  { %v63_v28 = vrot.slane %v62_v27, 2 }
  0xc2   :  { %v64_v29 = vadd.f32 %v63_v28, %v62_v27 }
  0xc4   :  { %v65_v30 = vrot.slane %v64_v29, 1 }
  0xc6   :  { %v66_v31 = vadd.f32 %v65_v30, %v64_v29 }
  0xc8   :  { %69 = vperm.xlu0 %90, %v66_v31  }
 0x147   :  { %v70_v32 = vpop.permute.xlu0 %69 }
 0x148   :  { %72 = vst [vmem:[#allocation3] sm:$0xff] %v70_v32 }
 0x149   :  { %104 = shalt.err (!%p101_p4)
}
 0x14a   :  { %s105_s20 = scalar_lea.hbm %s167_s3, 128 }
 0x14b   :  { %p106_p5 = scmp.ne.s32.totalorder %s167_s3, %s105_s20  ;;  %p109_p6 = scmp.lt.u32.totalorder %s105_s20, %s167_s3 }
 0x14d   :  { %p111_p7 = pnand %p109_p6, %p106_p5 }
 0x14f   :  { %114 = shalt.err (!%p111_p7)
}
 0x150   :  { %82 = dma.vmem_to_hbm [thread:$0]  %s80_s16, 128, %s167_s3, [#allocation4]  }
 0x151   :  { %115 = dma.done.wait [#allocation4], 128  }
 0x152   :  { %116 = vsyncadd [#allocation4], 4294967168 }
 0x153   :  { %86 = vsyncpa [#allocation4], 1 }

</bundles_post_ra>
